<compile_context>
chip_gen: v6e
topology: v6e:2x2x1
jax: 0.10.0
libtpu: 0.0.40
codegen_flags: <defaults>
</compile_context>

<pallas_src>
import math

import jax
import jax.numpy as jnp
from jax.experimental import pallas as pl
from jax.experimental.pallas import tpu as pltpu

_INV_SQRT_2PI = 1.0 / math.sqrt(2.0 * math.pi)


def _round_up(x, m):
    return ((x + m - 1) // m) * m


def _rbf_kernel(dist_ref, mean_ref, a_ref, coeff_ref, out_ref):
    # dist_ref: (TILE_E, 1); mean/a/coeff: (1, B); out_ref: (TILE_E, B)
    diff = dist_ref[...] - mean_ref[...]                      # -> (TILE_E, B)
    out_ref[...] = (coeff_ref[...] * jnp.exp(a_ref[...] * (diff * diff))
                    ).astype(out_ref.dtype)


def _choose_tile_e(E, B, out_itemsize,
                   target_block_bytes=6 << 20,
                   vmem_budget_bytes=24 << 20):
    """Pick the edge-tile size (multiple of 8 rows).

    VMEM accounting (double-buffered) uses the *lane-padded* row widths:
      - output block row: round_up(B, 128) * itemsize
      - (TILE_E, 1) f32 dist block row: padded to 128 lanes -> 512 B
    HBM-traffic targeting uses the real B (no padding is written).
    """
    out_row_hbm = B * out_itemsize
    out_row_vmem = _round_up(B, 128) * out_itemsize
    vmem_row = out_row_vmem + 128 * 4                      # + dist block row
    max_rows = max(8, (vmem_budget_bytes // (2 * vmem_row)) // 8 * 8)
    target_rows = min(
        max_rows,
        max(8, _round_up(target_block_bytes // max(out_row_hbm, 1), 8)))

    if E * out_row_hbm >= (1 << 20):
        # Non-trivial problem: keep an even number of grid steps so both v7x
        # TensorCores get equal work (near-free on 1-TC v5e/v6e).
        n_steps = 2 * max(1, pl.cdiv(E, 2 * target_rows))
    else:
        n_steps = max(1, pl.cdiv(E, target_rows))

    tile_e = _round_up(pl.cdiv(E, n_steps), 8)
    tile_e = min(tile_e, max_rows, _round_up(E, 8))
    return max(8, tile_e)


def gaussian_smearing(dist, mean, std, eps=1e-8, out_dtype=None):
    """dist: (E, 1); mean, std: (1, B) -> (E, B).

    out_dtype=jnp.bfloat16 halves HBM write traffic (compute stays f32) when
    the caller tolerates it; default matches dist.dtype (module semantics).
    """
    E, one = dist.shape
    assert one == 1
    _, B = mean.shape
    if out_dtype is None:
        out_dtype = dist.dtype

    # Fold per-basis constants once on the tiny (1, B) vectors (wrapper-side,
    # negligible XLA work); the kernel is then sub/mul/mul/exp per element.
    std_f = jnp.abs(std.astype(jnp.float32)) + eps
    inv_std = 1.0 / std_f
    coeff = inv_std * _INV_SQRT_2PI                # (1, B)
    a = -0.5 * inv_std * inv_std                   # (1, B)
    mean_f = mean.astype(jnp.float32)
    dist_f = dist.astype(jnp.float32)

    tile_e = _choose_tile_e(E, B, jnp.dtype(out_dtype).itemsize)
    grid = (pl.cdiv(E, tile_e),)                   # ragged last block: Pallas
                                                   # masks out-of-range rows.

    return pl.pallas_call(
        _rbf_kernel,
        out_shape=jax.ShapeDtypeStruct((E, B), out_dtype),
        grid_spec=pltpu.PrefetchScalarGridSpec(
            num_scalar_prefetch=0,
            grid=grid,
            in_specs=[
                pl.BlockSpec((tile_e, 1), lambda i: (i, 0)),   # dist tile
                pl.BlockSpec((1, B), lambda i: (0, 0)),        # mean (resident)
                pl.BlockSpec((1, B), lambda i: (0, 0)),        # a = -0.5/std^2
                pl.BlockSpec((1, B), lambda i: (0, 0)),        # coeff
            ],
            out_specs=pl.BlockSpec((tile_e, B), lambda i: (i, 0)),
        ),
        compiler_params=pltpu.CompilerParams(
            dimension_semantics=("parallel",),
            vmem_limit_bytes=32 << 20,
        ),
    )(dist_f, mean_f, a, coeff)


if __name__ == "__main__":
    cutoff = 5.0
    eps = 1e-8
    key = jax.random.PRNGKey(0)

    # Two small configs: ragged E with a lane-dense basis (128), and a basis
    # far from a multiple of 128 (50) exercising the unpadded/masked-store path.
    for E, num_basis in ((300, 128), (523, 50)):
        key, k_mean, k_std, k_dist = jax.random.split(key, 4)

        # Deterministic parameter init mirroring the module's __init__:
        #   mean ~ U(0, cutoff), std ~ U(1/num_basis, 1)
        mean = jax.random.uniform(
            k_mean, (1, num_basis), minval=0.0, maxval=cutoff,
            dtype=jnp.float32)
        std = jax.random.uniform(
            k_std, (1, num_basis), minval=1.0 / num_basis, maxval=1.0,
            dtype=jnp.float32)
        dist = jax.random.uniform(
            k_dist, (E, 1), minval=0.0, maxval=cutoff, dtype=jnp.float32)

        out = jax.block_until_ready(gaussian_smearing(dist, mean, std, eps=eps))

        # Pure-JAX reference (same math as the PyTorch forward).
        std_ref = jnp.abs(std) + eps
        coeff_ref = 1.0 / (std_ref * math.sqrt(2.0 * math.pi))
        ref = coeff_ref * jnp.exp(-0.5 * ((dist - mean) / std_ref) ** 2)

        assert out.shape == (E, num_basis)
        assert jnp.allclose(out, ref, atol=1e-5, rtol=1e-5)

    print("KERNEL_OK")
</pallas_src>

<mosaic_0001>
module attributes {stable_mosaic.version = 11 : i64} {
  func.func @_rbf_kernel(%arg0: i32, %arg1: memref<304x1xf32, #tpu.memory_space<vmem>>, %arg2: memref<1x128xf32, #tpu.memory_space<vmem>>, %arg3: memref<1x128xf32, #tpu.memory_space<vmem>>, %arg4: memref<1x128xf32, #tpu.memory_space<vmem>>, %arg5: memref<304x128xf32, #tpu.memory_space<vmem>>) attributes {dimension_semantics = [#tpu.dimension_semantics<parallel>], iteration_bounds = array<i64: 1>, scalar_prefetch = 0 : i64, scratch_operands = 0 : i64, tpu.core_type = #tpu.core_type<tc>, window_params = [{transform_indices = @transform_0, window_bounds = array<i64: 304, 1>}, {pipeline_mode = #tpu.pipeline_mode<synchronous>, transform_indices = @transform_1, window_bounds = array<i64: 1, 128>}, {pipeline_mode = #tpu.pipeline_mode<synchronous>, transform_indices = @transform_2, window_bounds = array<i64: 1, 128>}, {pipeline_mode = #tpu.pipeline_mode<synchronous>, transform_indices = @transform_3, window_bounds = array<i64: 1, 128>}, {transform_indices = @transform_4, window_bounds = array<i64: 304, 128>}]} {
    %c0 = arith.constant 0 : index
    %c0_0 = arith.constant 0 : index
    %0 = vector.load %arg1[%c0, %c0_0] : memref<304x1xf32, #tpu.memory_space<vmem>>, vector<304x1xf32>
    %c0_1 = arith.constant 0 : index
    %c0_2 = arith.constant 0 : index
    %1 = vector.load %arg2[%c0_1, %c0_2] : memref<1x128xf32, #tpu.memory_space<vmem>>, vector<1x128xf32>
    %2 = vector.broadcast %0 : vector<304x1xf32> to vector<304x128xf32>
    %3 = vector.broadcast %1 : vector<1x128xf32> to vector<304x128xf32>
    %4 = arith.subf %2, %3 : vector<304x128xf32>
    %c0_3 = arith.constant 0 : index
    %c0_4 = arith.constant 0 : index
    %5 = vector.load %arg4[%c0_3, %c0_4] : memref<1x128xf32, #tpu.memory_space<vmem>>, vector<1x128xf32>
    %c0_5 = arith.constant 0 : index
    %c0_6 = arith.constant 0 : index
    %6 = vector.load %arg3[%c0_5, %c0_6] : memref<1x128xf32, #tpu.memory_space<vmem>>, vector<1x128xf32>
    %7 = arith.mulf %4, %4 : vector<304x128xf32>
    %8 = vector.broadcast %6 : vector<1x128xf32> to vector<304x128xf32>
    %9 = arith.mulf %8, %7 : vector<304x128xf32>
    %10 = math.exp %9 : vector<304x128xf32>
    %11 = vector.broadcast %5 : vector<1x128xf32> to vector<304x128xf32>
    %12 = arith.mulf %11, %10 : vector<304x128xf32>
    %c0_7 = arith.constant 0 : index
    %c0_8 = arith.constant 0 : index
    %13 = vector.load %arg5[%c0_7, %c0_8] : memref<304x128xf32, #tpu.memory_space<vmem>>, vector<304x128xf32>
    tpu.vector_store %arg5[%c0_7, %c0_8], %12 {strides = array<i32>} : memref<304x128xf32, #tpu.memory_space<vmem>>, vector<304x128xf32>,
    return
  }
  func.func @transform_0(%arg0: i32) -> (i32, i32) {
    %c0_i32 = arith.constant 0 : i32
    %c0_i32_0 = arith.constant 0 : i32
    return %arg0, %c0_i32 : i32, i32
  }
  func.func @transform_1(%arg0: i32) -> (i32, i32) {
    %c0_i32 = arith.constant 0 : i32
    %c0_i32_0 = arith.constant 0 : i32
    %c0_i32_1 = arith.constant 0 : i32
    return %c0_i32, %c0_i32_0 : i32, i32
  }
  func.func @transform_2(%arg0: i32) -> (i32, i32) {
    %c0_i32 = arith.constant 0 : i32
    %c0_i32_0 = arith.constant 0 : i32
    %c0_i32_1 = arith.constant 0 : i32
    return %c0_i32, %c0_i32_0 : i32, i32
  }
  func.func @transform_3(%arg0: i32) -> (i32, i32) {
    %c0_i32 = arith.constant 0 : i32
    %c0_i32_0 = arith.constant 0 : i32
    %c0_i32_1 = arith.constant 0 : i32
    return %c0_i32, %c0_i32_0 : i32, i32
  }
  func.func @transform_4(%arg0: i32) -> (i32, i32) {
    %c0_i32 = arith.constant 0 : i32
    %c0_i32_0 = arith.constant 0 : i32
    return %arg0, %c0_i32 : i32, i32
  }
}

</mosaic_0001>

<bundles_post_ra>
// kernel: tpu_custom_call.1
= control target key start
LH: loop header
LB: loop body
LE: loop exit
PB: predicated region body
PF: predicated region fallthrough
CT: control target
= control target key end

     0   :  { %v656_v2 = vmov 0   ;;  %s931_s0 = inlined_call_operand.vmem [shape: f32[300,1], index: 0, kind: input, shape index: {}]   ;;  %s932_s1 = inlined_call_operand.vmem [shape: f32[1,128], index: 1, kind: input, shape index: {}]   ;;  %s933_s2 = inlined_call_operand.vmem [shape: f32[1,128], index: 2, kind: input, shape index: {}]   ;;  %s934_s3 = inlined_call_operand.vmem [shape: f32[1,128], index: 3, kind: input, shape index: {}]   ;;  %s935_s4 = inlined_call_operand.hbm [shape: f32[300,128], index: 4, kind: output, shape index: {}]  }
   0x1   :  { %v20_v0 = vld [vmem:[%s931_s0 + $0x10] sm:$0xff]  ;;  %v18_v1 = vld [vmem:[%s931_s0] sm:$0xff]  ;;  %557 = vset.pattern.permute.xlu1 %v656_v2  ;;  %556 = vset.pattern.permute.xlu0 %v656_v2  ;;  %v21_v3 = vld [vmem:[%s931_s0 + $0x18] sm:$0xff] }
   0x2   :  { %69 = vperm.xlu1 %557, %v20_v0   ;;  %59 = vperm.xlu0 %556, %v18_v1   ;;  %v19_v4 = vld [vmem:[%s931_s0 + $0x8] sm:$0xff]  ;;  %v22_v6 = vld [vmem:[%s931_s0 + $0x20] sm:$0xff]  ;;  %v25_v7 = vld [vmem:[%s931_s0 + $0x38] sm:$0xff] }
   0x3   :  { %v23_v5 = vld [vmem:[%s931_s0 + $0x28] sm:$0xff]  ;;  %v24_v8 = vld [vmem:[%s931_s0 + $0x30] sm:$0xff] }
   0x6   :  { %74 = vperm.xlu1 %557, %v21_v3   ;;  %64 = vperm.xlu0 %556, %v19_v4  }
   0xa   :  { %84 = vperm.xlu1 %557, %v23_v5   ;;  %79 = vperm.xlu0 %556, %v22_v6  }
   0xb   :  { %9 = vsyncpa [#allocation3], 0  ;;  %v27_v9 = vld [vmem:[%s931_s0 + $0x48] sm:$0xff]  ;;  %v26_v10 = vld [vmem:[%s931_s0 + $0x40] sm:$0xff] }
   0xc   :  { %v29_v11 = vld [vmem:[%s931_s0 + $0x58] sm:$0xff]  ;;  %v28_v12 = vld [vmem:[%s931_s0 + $0x50] sm:$0xff]  ;;  %v31_v13 = vld [vmem:[%s931_s0 + $0x68] sm:$0xff] }
   0xd   :  { %v30_v14 = vld [vmem:[%s931_s0 + $0x60] sm:$0xff]  ;;  %v33_v15 = vld [vmem:[%s931_s0 + $0x78] sm:$0xff]  ;;  %v32_v16 = vld [vmem:[%s931_s0 + $0x70] sm:$0xff] }
   0xe   :  { %94 = vperm.xlu1 %557, %v25_v7   ;;  %89 = vperm.xlu0 %556, %v24_v8   ;;  %v35_v17 = vld [vmem:[%s931_s0 + $0x88] sm:$0xff]  ;;  %v34_v18 = vld [vmem:[%s931_s0 + $0x80] sm:$0xff]  ;;  %v37_v19 = vld [vmem:[%s931_s0 + $0x98] sm:$0xff] }
   0xf   :  { %v36_v20 = vld [vmem:[%s931_s0 + $0x90] sm:$0xff]  ;;  %v39_v21 = vld [vmem:[%s931_s0 + $0xa8] sm:$0xff]  ;;  %v38_v22 = vld [vmem:[%s931_s0 + $0xa0] sm:$0xff] }
  0x10   :  { %v41_v23 = vld [vmem:[%s931_s0 + $0xb8] sm:$0xff]  ;;  %v40_v24 = vld [vmem:[%s931_s0 + $0xb0] sm:$0xff]  ;;  %v43_v25 = vld [vmem:[%s931_s0 + $0xc8] sm:$0xff] }
  0x11   :  { %v42_v26 = vld [vmem:[%s931_s0 + $0xc0] sm:$0xff]  ;;  %v45_v27 = vld [vmem:[%s931_s0 + $0xd8] sm:$0xff]  ;;  %v44_v28 = vld [vmem:[%s931_s0 + $0xd0] sm:$0xff] }
  0x12   :  { %104 = vperm.xlu1 %557, %v27_v9   ;;  %99 = vperm.xlu0 %556, %v26_v10   ;;  %v47_v29 = vld [vmem:[%s931_s0 + $0xe8] sm:$0xff]  ;;  %v46_v30 = vld [vmem:[%s931_s0 + $0xe0] sm:$0xff]  ;;  %v49_v31 = vld [vmem:[%s931_s0 + $0xf8] sm:$0xff] }
  0x13   :  { %v48_v32 = vld [vmem:[%s931_s0 + $0xf0] sm:$0xff]  ;;  %v51_v33 = vld [vmem:[%s931_s0 + $0x108] sm:$0xff]  ;;  %v50_v34 = vld [vmem:[%s931_s0 + $0x100] sm:$0xff] }
  0x14   :  { %v53_v35 = vld [vmem:[%s931_s0 + $0x118] sm:$0xff]  ;;  %v52_v36 = vld [vmem:[%s931_s0 + $0x110] sm:$0xff]  ;;  %v55_v37 = vld [vmem:[%s931_s0 + $0x128] sm:$0xff] }
  0x15   :  { %v54_v38 = vld [vmem:[%s931_s0 + $0x120] sm:$0xff] }
  0x16   :  { %114 = vperm.xlu1 %557, %v29_v11   ;;  %109 = vperm.xlu0 %556, %v28_v12   ;;  %v802_v39 = vld [vmem:[%s932_s1] ss:$0 sm:$0xff] }
  0x17   :  { %v809_v44 = vld [vmem:[%s933_s2] ss:$0 sm:$0xff]  ;;  %s657_s2 = smov [#allocation2]  }
  0x1a   :  { %124 = vperm.xlu1 %557, %v31_v13   ;;  %119 = vperm.xlu0 %556, %v30_v14  }
  0x1e   :  { %134 = vperm.xlu1 %557, %v33_v15   ;;  %129 = vperm.xlu0 %556, %v32_v16  }
  0x22   :  { %144 = vperm.xlu1 %557, %v35_v17   ;;  %139 = vperm.xlu0 %556, %v34_v18  }
  0x26   :  { %154 = vperm.xlu1 %557, %v37_v19   ;;  %149 = vperm.xlu0 %556, %v36_v20  }
  0x2a   :  { %164 = vperm.xlu1 %557, %v39_v21   ;;  %159 = vperm.xlu0 %556, %v38_v22   ;;  %v830_v22 = vld [vmem:[%s934_s3] ss:$0 sm:$0xff]  ;;  %s538_s3 = sshll.u32 %s657_s2, 4  ;;  %s539_s3 = int_to_ptr.vmem [resolvable:$true] %s538_s3 }
  0x2b   :  { %s634_s17 = scalar_lea.vmem %s539_s3, 4864  ;;  %p639_p1 = scmp.lt.s32.totalorder %s539_s3, %s539_s3 }
  0x2c   :  { %p635_p0 = scmp.ne.s32.totalorder %s539_s3, %s634_s17  ;;  %p640_p2 = scmp.lt.s32.totalorder %s634_s17, %s634_s17 }
  0x2e   :  { %174 = vperm.xlu1 %557, %v41_v23   ;;  %169 = vperm.xlu0 %556, %v40_v24   ;;  %p641_p3 = por %p640_p2, %p639_p1 }
  0x30   :  { %p642_p4 = pnand %p641_p3, %p635_p0 }
  0x32   :  { %184 = vperm.xlu1 %557, %v43_v25   ;;  %179 = vperm.xlu0 %556, %v42_v26  }
  0x36   :  { %194 = vperm.xlu1 %557, %v45_v27   ;;  %189 = vperm.xlu0 %556, %v44_v28  }
  0x3a   :  { %204 = vperm.xlu1 %557, %v47_v29   ;;  %199 = vperm.xlu0 %556, %v46_v30  }
  0x3e   :  { %214 = vperm.xlu1 %557, %v49_v31   ;;  %209 = vperm.xlu0 %556, %v48_v32  }
  0x42   :  { %224 = vperm.xlu1 %557, %v51_v33   ;;  %219 = vperm.xlu0 %556, %v50_v34  }
  0x46   :  { %234 = vperm.xlu1 %557, %v53_v35   ;;  %229 = vperm.xlu0 %556, %v52_v36  }
  0x4a   :  { %244 = vperm.xlu1 %557, %v55_v37   ;;  %239 = vperm.xlu0 %556, %v54_v38  }
  0x7d   :  { %v70_v40 = vpop.permute.xlu1 %69  ;;  %v60_v41 = vpop.permute.xlu0 %59 }
  0x7e   :  { %v255_v42 = vsub.f32 %v70_v40, %v802_v39  ;;  %v253_v43 = vsub.f32 %v60_v41, %v802_v39 }
  0x80   :  { %v295_v45 = vmul.f32 %v255_v42, %v255_v42  ;;  %v293_v46 = vmul.f32 %v253_v43, %v253_v43 }
  0x81   :  { %v75_v47 = vpop.permute.xlu1 %74  ;;  %v65_v48 = vpop.permute.xlu0 %64 }
  0x82   :  { %v339_v49 = vmul.f32 %v809_v44, %v295_v45  ;;  %v337_v50 = vmul.f32 %v809_v44, %v293_v46  ;;  %v256_v51 = vsub.f32 %v75_v47, %v802_v39  ;;  %v254_v52 = vsub.f32 %v65_v48, %v802_v39 }
  0x84   :  { %v379_v53 = vmul.f32 1.442695, %v339_v49  ;;  %v375_v54 = vmul.f32 1.442695, %v337_v50  ;;  %v296_v55 = vmul.f32 %v256_v51, %v256_v51  ;;  %v294_v56 = vmul.f32 %v254_v52, %v254_v52 }
  0x85   :  { %v85_v57 = vpop.permute.xlu1 %84  ;;  %v80_v58 = vpop.permute.xlu0 %79 }
  0x86   :  { %558 = vpow2.f32 %v379_v53  ;;  %v340_v59 = vmul.f32 %v809_v44, %v296_v55  ;;  %v338_v60 = vmul.f32 %v809_v44, %v294_v56  ;;  %v258_v61 = vsub.f32 %v85_v57, %v802_v39 }
  0x87   :  { %560 = vpow2.f32 %v375_v54  ;;  %v257_v62 = vsub.f32 %v80_v58, %v802_v39 }
  0x88   :  { %v381_v63 = vmul.f32 1.442695, %v340_v59  ;;  %v377_v0 = vmul.f32 1.442695, %v338_v60  ;;  %v298_v1 = vmul.f32 %v258_v61, %v258_v61 }
  0x89   :  { %v297_v2 = vmul.f32 %v257_v62, %v257_v62  ;;  %v95_v3 = vpop.permute.xlu1 %94  ;;  %v90_v4 = vpop.permute.xlu0 %89 }
  0x8a   :  { %562 = vpow2.f32 %v381_v63  ;;  %v342_v5 = vmul.f32 %v809_v44, %v298_v1  ;;  %v260_v6 = vsub.f32 %v95_v3, %v802_v39  ;;  %v259_v7 = vsub.f32 %v90_v4, %v802_v39 }
  0x8b   :  { %564 = vpow2.f32 %v377_v0  ;;  %v341_v8 = vmul.f32 %v809_v44, %v297_v2 }
  0x8c   :  { %v385_v9 = vmul.f32 1.442695, %v342_v5  ;;  %v300_v10 = vmul.f32 %v260_v6, %v260_v6  ;;  %v299_v11 = vmul.f32 %v259_v7, %v259_v7 }
  0x8d   :  { %v383_v12 = vmul.f32 1.442695, %v341_v8  ;;  %v105_v13 = vpop.permute.xlu1 %104  ;;  %v100_v14 = vpop.permute.xlu0 %99 }
  0x8e   :  { %566 = vpow2.f32 %v385_v9  ;;  %v344_v15 = vmul.f32 %v809_v44, %v300_v10  ;;  %v343_v16 = vmul.f32 %v809_v44, %v299_v11  ;;  %v262_v17 = vsub.f32 %v105_v13, %v802_v39 }
  0x8f   :  { %568 = vpow2.f32 %v383_v12  ;;  %v261_v18 = vsub.f32 %v100_v14, %v802_v39 }
  0x90   :  { %v389_v19 = vmul.f32 1.442695, %v344_v15  ;;  %v387_v20 = vmul.f32 1.442695, %v343_v16  ;;  %v302_v21 = vmul.f32 %v262_v17, %v262_v17 }
  0x91   :  { %v301_v23 = vmul.f32 %v261_v18, %v261_v18  ;;  %v115_v24 = vpop.permute.xlu1 %114  ;;  %v110_v25 = vpop.permute.xlu0 %109 }
  0x92   :  { %570 = vpow2.f32 %v389_v19  ;;  %v346_v26 = vmul.f32 %v809_v44, %v302_v21  ;;  %v264_v27 = vsub.f32 %v115_v24, %v802_v39  ;;  %v263_v28 = vsub.f32 %v110_v25, %v802_v39 }
  0x93   :  { %v559_v29 = vpop.eup %558  ;;  %572 = vpow2.f32 %v387_v20  ;;  %v345_v30 = vmul.f32 %v809_v44, %v301_v23 }
  0x94   :  { %v561_v31 = vpop.eup %560  ;;  %v459_v32 = vmul.f32 %v559_v29, %v830_v22  ;;  %v393_v33 = vmul.f32 1.442695, %v346_v26  ;;  %v304_v34 = vmul.f32 %v264_v27, %v264_v27  ;;  %v303_v35 = vmul.f32 %v263_v28, %v263_v28 }
  0x95   :  { %v457_v36 = vmul.f32 %v561_v31, %v830_v22  ;;  %v391_v37 = vmul.f32 1.442695, %v345_v30  ;;  %v125_v38 = vpop.permute.xlu1 %124  ;;  %v120_v40 = vpop.permute.xlu0 %119 }
  0x96   :  { %497 = vst [vmem:[#allocation2 + $0x10] sm:$0xff] %v459_v32  ;;  %574 = vpow2.f32 %v393_v33  ;;  %v348_v41 = vmul.f32 %v809_v44, %v304_v34  ;;  %v347_v42 = vmul.f32 %v809_v44, %v303_v35  ;;  %v266_v43 = vsub.f32 %v125_v38, %v802_v39 }
  0x97   :  { %v563_v45 = vpop.eup %562  ;;  %495 = vst [vmem:[#allocation2] sm:$0xff] %v457_v36  ;;  %576 = vpow2.f32 %v391_v37  ;;  %v265_v46 = vsub.f32 %v120_v40, %v802_v39 }
  0x98   :  { %v565_v47 = vpop.eup %564  ;;  %v460_v48 = vmul.f32 %v563_v45, %v830_v22  ;;  %v397_v49 = vmul.f32 1.442695, %v348_v41  ;;  %v395_v50 = vmul.f32 1.442695, %v347_v42  ;;  %v306_v51 = vmul.f32 %v266_v43, %v266_v43 }
  0x99   :  { %v458_v52 = vmul.f32 %v565_v47, %v830_v22  ;;  %v305_v53 = vmul.f32 %v265_v46, %v265_v46  ;;  %v135_v54 = vpop.permute.xlu1 %134  ;;  %v130_v55 = vpop.permute.xlu0 %129 }
  0x9a   :  { %498 = vst [vmem:[#allocation2 + $0x18] sm:$0xff] %v460_v48  ;;  %578 = vpow2.f32 %v397_v49  ;;  %v350_v56 = vmul.f32 %v809_v44, %v306_v51  ;;  %v268_v57 = vsub.f32 %v135_v54, %v802_v39  ;;  %v267_v58 = vsub.f32 %v130_v55, %v802_v39 }
  0x9b   :  { %v567_v59 = vpop.eup %566  ;;  %496 = vst [vmem:[#allocation2 + $0x8] sm:$0xff] %v458_v52  ;;  %580 = vpow2.f32 %v395_v50  ;;  %v349_v60 = vmul.f32 %v809_v44, %v305_v53 }
  0x9c   :  { %v569_v61 = vpop.eup %568  ;;  %v462_v62 = vmul.f32 %v567_v59, %v830_v22  ;;  %v401_v63 = vmul.f32 1.442695, %v350_v56  ;;  %v308_v0 = vmul.f32 %v268_v57, %v268_v57  ;;  %v307_v1 = vmul.f32 %v267_v58, %v267_v58 }
  0x9d   :  { %v461_v2 = vmul.f32 %v569_v61, %v830_v22  ;;  %v399_v3 = vmul.f32 1.442695, %v349_v60  ;;  %v145_v4 = vpop.permute.xlu1 %144  ;;  %v140_v5 = vpop.permute.xlu0 %139 }
  0x9e   :  { %500 = vst [vmem:[#allocation2 + $0x28] sm:$0xff] %v462_v62  ;;  %582 = vpow2.f32 %v401_v63  ;;  %v352_v6 = vmul.f32 %v809_v44, %v308_v0  ;;  %v351_v7 = vmul.f32 %v809_v44, %v307_v1  ;;  %v270_v8 = vsub.f32 %v145_v4, %v802_v39 }
  0x9f   :  { %v571_v9 = vpop.eup %570  ;;  %499 = vst [vmem:[#allocation2 + $0x20] sm:$0xff] %v461_v2  ;;  %584 = vpow2.f32 %v399_v3  ;;  %v269_v10 = vsub.f32 %v140_v5, %v802_v39 }
  0xa0   :  { %v573_v11 = vpop.eup %572  ;;  %v464_v12 = vmul.f32 %v571_v9, %v830_v22  ;;  %v405_v13 = vmul.f32 1.442695, %v352_v6  ;;  %v403_v14 = vmul.f32 1.442695, %v351_v7  ;;  %v310_v15 = vmul.f32 %v270_v8, %v270_v8 }
  0xa1   :  { %v463_v16 = vmul.f32 %v573_v11, %v830_v22  ;;  %v309_v17 = vmul.f32 %v269_v10, %v269_v10  ;;  %v155_v18 = vpop.permute.xlu1 %154  ;;  %v150_v19 = vpop.permute.xlu0 %149 }
  0xa2   :  { %502 = vst [vmem:[#allocation2 + $0x38] sm:$0xff] %v464_v12  ;;  %586 = vpow2.f32 %v405_v13  ;;  %v354_v20 = vmul.f32 %v809_v44, %v310_v15  ;;  %v272_v21 = vsub.f32 %v155_v18, %v802_v39  ;;  %v271_v23 = vsub.f32 %v150_v19, %v802_v39 }
  0xa3   :  { %v575_v24 = vpop.eup %574  ;;  %501 = vst [vmem:[#allocation2 + $0x30] sm:$0xff] %v463_v16  ;;  %588 = vpow2.f32 %v403_v14  ;;  %v353_v25 = vmul.f32 %v809_v44, %v309_v17 }
  0xa4   :  { %v577_v26 = vpop.eup %576  ;;  %v466_v27 = vmul.f32 %v575_v24, %v830_v22  ;;  %v409_v28 = vmul.f32 1.442695, %v354_v20  ;;  %v312_v29 = vmul.f32 %v272_v21, %v272_v21  ;;  %v311_v30 = vmul.f32 %v271_v23, %v271_v23 }
  0xa5   :  { %v465_v31 = vmul.f32 %v577_v26, %v830_v22  ;;  %v407_v32 = vmul.f32 1.442695, %v353_v25  ;;  %v165_v33 = vpop.permute.xlu1 %164  ;;  %v160_v34 = vpop.permute.xlu0 %159 }
  0xa6   :  { %504 = vst [vmem:[#allocation2 + $0x48] sm:$0xff] %v466_v27  ;;  %590 = vpow2.f32 %v409_v28  ;;  %v356_v35 = vmul.f32 %v809_v44, %v312_v29  ;;  %v355_v36 = vmul.f32 %v809_v44, %v311_v30  ;;  %v274_v37 = vsub.f32 %v165_v33, %v802_v39 }
  0xa7   :  { %v579_v38 = vpop.eup %578  ;;  %503 = vst [vmem:[#allocation2 + $0x40] sm:$0xff] %v465_v31  ;;  %592 = vpow2.f32 %v407_v32  ;;  %v273_v40 = vsub.f32 %v160_v34, %v802_v39 }
  0xa8   :  { %v581_v41 = vpop.eup %580  ;;  %v468_v42 = vmul.f32 %v579_v38, %v830_v22  ;;  %v413_v43 = vmul.f32 1.442695, %v356_v35  ;;  %v411_v45 = vmul.f32 1.442695, %v355_v36  ;;  %v314_v46 = vmul.f32 %v274_v37, %v274_v37 }
  0xa9   :  { %v467_v47 = vmul.f32 %v581_v41, %v830_v22  ;;  %v313_v48 = vmul.f32 %v273_v40, %v273_v40  ;;  %v175_v49 = vpop.permute.xlu1 %174  ;;  %v170_v50 = vpop.permute.xlu0 %169 }
  0xaa   :  { %506 = vst [vmem:[#allocation2 + $0x58] sm:$0xff] %v468_v42  ;;  %594 = vpow2.f32 %v413_v43  ;;  %v358_v51 = vmul.f32 %v809_v44, %v314_v46  ;;  %v276_v52 = vsub.f32 %v175_v49, %v802_v39  ;;  %v275_v53 = vsub.f32 %v170_v50, %v802_v39 }
  0xab   :  { %v583_v54 = vpop.eup %582  ;;  %505 = vst [vmem:[#allocation2 + $0x50] sm:$0xff] %v467_v47  ;;  %596 = vpow2.f32 %v411_v45  ;;  %v357_v55 = vmul.f32 %v809_v44, %v313_v48 }
  0xac   :  { %v585_v56 = vpop.eup %584  ;;  %v470_v57 = vmul.f32 %v583_v54, %v830_v22  ;;  %v417_v58 = vmul.f32 1.442695, %v358_v51  ;;  %v316_v59 = vmul.f32 %v276_v52, %v276_v52  ;;  %v315_v60 = vmul.f32 %v275_v53, %v275_v53 }
  0xad   :  { %v469_v61 = vmul.f32 %v585_v56, %v830_v22  ;;  %v415_v62 = vmul.f32 1.442695, %v357_v55  ;;  %v185_v63 = vpop.permute.xlu1 %184  ;;  %v180_v0 = vpop.permute.xlu0 %179 }
  0xae   :  { %508 = vst [vmem:[#allocation2 + $0x68] sm:$0xff] %v470_v57  ;;  %598 = vpow2.f32 %v417_v58  ;;  %v360_v1 = vmul.f32 %v809_v44, %v316_v59  ;;  %v359_v2 = vmul.f32 %v809_v44, %v315_v60  ;;  %v278_v3 = vsub.f32 %v185_v63, %v802_v39 }
  0xaf   :  { %v587_v4 = vpop.eup %586  ;;  %507 = vst [vmem:[#allocation2 + $0x60] sm:$0xff] %v469_v61  ;;  %600 = vpow2.f32 %v415_v62  ;;  %v277_v5 = vsub.f32 %v180_v0, %v802_v39 }
  0xb0   :  { %v589_v6 = vpop.eup %588  ;;  %v472_v7 = vmul.f32 %v587_v4, %v830_v22  ;;  %v421_v8 = vmul.f32 1.442695, %v360_v1  ;;  %v419_v9 = vmul.f32 1.442695, %v359_v2  ;;  %v318_v10 = vmul.f32 %v278_v3, %v278_v3 }
  0xb1   :  { %v471_v11 = vmul.f32 %v589_v6, %v830_v22  ;;  %v317_v12 = vmul.f32 %v277_v5, %v277_v5  ;;  %v195_v13 = vpop.permute.xlu1 %194  ;;  %v190_v14 = vpop.permute.xlu0 %189 }
  0xb2   :  { %510 = vst [vmem:[#allocation2 + $0x78] sm:$0xff] %v472_v7  ;;  %602 = vpow2.f32 %v421_v8  ;;  %v362_v15 = vmul.f32 %v809_v44, %v318_v10  ;;  %v280_v16 = vsub.f32 %v195_v13, %v802_v39  ;;  %v279_v17 = vsub.f32 %v190_v14, %v802_v39 }
  0xb3   :  { %v591_v18 = vpop.eup %590  ;;  %509 = vst [vmem:[#allocation2 + $0x70] sm:$0xff] %v471_v11  ;;  %604 = vpow2.f32 %v419_v9  ;;  %v361_v19 = vmul.f32 %v809_v44, %v317_v12 }
  0xb4   :  { %v593_v20 = vpop.eup %592  ;;  %v474_v21 = vmul.f32 %v591_v18, %v830_v22  ;;  %v425_v23 = vmul.f32 1.442695, %v362_v15  ;;  %v320_v24 = vmul.f32 %v280_v16, %v280_v16  ;;  %v319_v25 = vmul.f32 %v279_v17, %v279_v17 }
  0xb5   :  { %v473_v26 = vmul.f32 %v593_v20, %v830_v22  ;;  %v423_v27 = vmul.f32 1.442695, %v361_v19  ;;  %v205_v28 = vpop.permute.xlu1 %204  ;;  %v200_v29 = vpop.permute.xlu0 %199 }
  0xb6   :  { %512 = vst [vmem:[#allocation2 + $0x88] sm:$0xff] %v474_v21  ;;  %606 = vpow2.f32 %v425_v23  ;;  %v364_v30 = vmul.f32 %v809_v44, %v320_v24  ;;  %v363_v31 = vmul.f32 %v809_v44, %v319_v25  ;;  %v282_v32 = vsub.f32 %v205_v28, %v802_v39 }
  0xb7   :  { %v595_v33 = vpop.eup %594  ;;  %511 = vst [vmem:[#allocation2 + $0x80] sm:$0xff] %v473_v26  ;;  %608 = vpow2.f32 %v423_v27  ;;  %v281_v34 = vsub.f32 %v200_v29, %v802_v39 }
  0xb8   :  { %v597_v35 = vpop.eup %596  ;;  %v476_v36 = vmul.f32 %v595_v33, %v830_v22  ;;  %v429_v37 = vmul.f32 1.442695, %v364_v30  ;;  %v427_v38 = vmul.f32 1.442695, %v363_v31  ;;  %v322_v40 = vmul.f32 %v282_v32, %v282_v32 }
  0xb9   :  { %v475_v41 = vmul.f32 %v597_v35, %v830_v22  ;;  %v321_v42 = vmul.f32 %v281_v34, %v281_v34  ;;  %v215_v43 = vpop.permute.xlu1 %214  ;;  %v210_v45 = vpop.permute.xlu0 %209 }
  0xba   :  { %514 = vst [vmem:[#allocation2 + $0x98] sm:$0xff] %v476_v36  ;;  %610 = vpow2.f32 %v429_v37  ;;  %v366_v46 = vmul.f32 %v809_v44, %v322_v40  ;;  %v284_v47 = vsub.f32 %v215_v43, %v802_v39  ;;  %v283_v48 = vsub.f32 %v210_v45, %v802_v39 }
  0xbb   :  { %v599_v49 = vpop.eup %598  ;;  %513 = vst [vmem:[#allocation2 + $0x90] sm:$0xff] %v475_v41  ;;  %612 = vpow2.f32 %v427_v38  ;;  %v365_v50 = vmul.f32 %v809_v44, %v321_v42 }
  0xbc   :  { %v601_v51 = vpop.eup %600  ;;  %v478_v52 = vmul.f32 %v599_v49, %v830_v22  ;;  %v433_v53 = vmul.f32 1.442695, %v366_v46  ;;  %v324_v54 = vmul.f32 %v284_v47, %v284_v47  ;;  %v323_v55 = vmul.f32 %v283_v48, %v283_v48 }
  0xbd   :  { %v477_v56 = vmul.f32 %v601_v51, %v830_v22  ;;  %v431_v57 = vmul.f32 1.442695, %v365_v50  ;;  %v225_v58 = vpop.permute.xlu1 %224  ;;  %v220_v59 = vpop.permute.xlu0 %219 }
  0xbe   :  { %516 = vst [vmem:[#allocation2 + $0xa8] sm:$0xff] %v478_v52  ;;  %614 = vpow2.f32 %v433_v53  ;;  %v368_v60 = vmul.f32 %v809_v44, %v324_v54  ;;  %v367_v61 = vmul.f32 %v809_v44, %v323_v55  ;;  %v286_v62 = vsub.f32 %v225_v58, %v802_v39 }
  0xbf   :  { %v603_v63 = vpop.eup %602  ;;  %515 = vst [vmem:[#allocation2 + $0xa0] sm:$0xff] %v477_v56  ;;  %616 = vpow2.f32 %v431_v57  ;;  %v285_v0 = vsub.f32 %v220_v59, %v802_v39 }
  0xc0   :  { %v605_v1 = vpop.eup %604  ;;  %v480_v2 = vmul.f32 %v603_v63, %v830_v22  ;;  %v437_v3 = vmul.f32 1.442695, %v368_v60  ;;  %v435_v4 = vmul.f32 1.442695, %v367_v61  ;;  %v326_v5 = vmul.f32 %v286_v62, %v286_v62 }
  0xc1   :  { %v479_v6 = vmul.f32 %v605_v1, %v830_v22  ;;  %v325_v7 = vmul.f32 %v285_v0, %v285_v0  ;;  %v235_v8 = vpop.permute.xlu1 %234  ;;  %v230_v9 = vpop.permute.xlu0 %229 }
  0xc2   :  { %518 = vst [vmem:[#allocation2 + $0xb8] sm:$0xff] %v480_v2  ;;  %618 = vpow2.f32 %v437_v3  ;;  %v370_v10 = vmul.f32 %v809_v44, %v326_v5  ;;  %v288_v11 = vsub.f32 %v235_v8, %v802_v39  ;;  %v287_v12 = vsub.f32 %v230_v9, %v802_v39 }
  0xc3   :  { %v607_v13 = vpop.eup %606  ;;  %517 = vst [vmem:[#allocation2 + $0xb0] sm:$0xff] %v479_v6  ;;  %620 = vpow2.f32 %v435_v4  ;;  %v369_v14 = vmul.f32 %v809_v44, %v325_v7 }
  0xc4   :  { %v609_v15 = vpop.eup %608  ;;  %v482_v16 = vmul.f32 %v607_v13, %v830_v22  ;;  %v441_v17 = vmul.f32 1.442695, %v370_v10  ;;  %v328_v18 = vmul.f32 %v288_v11, %v288_v11  ;;  %v327_v19 = vmul.f32 %v287_v12, %v287_v12 }
  0xc5   :  { %v481_v20 = vmul.f32 %v609_v15, %v830_v22  ;;  %v439_v21 = vmul.f32 1.442695, %v369_v14  ;;  %v245_v23 = vpop.permute.xlu1 %244  ;;  %v240_v24 = vpop.permute.xlu0 %239 }
  0xc6   :  { %520 = vst [vmem:[#allocation2 + $0xc8] sm:$0xff] %v482_v16  ;;  %622 = vpow2.f32 %v441_v17  ;;  %v372_v25 = vmul.f32 %v809_v44, %v328_v18  ;;  %v371_v26 = vmul.f32 %v809_v44, %v327_v19  ;;  %v290_v27 = vsub.f32 %v245_v23, %v802_v39 }
  0xc7   :  { %v611_v28 = vpop.eup %610  ;;  %519 = vst [vmem:[#allocation2 + $0xc0] sm:$0xff] %v481_v20  ;;  %624 = vpow2.f32 %v439_v21  ;;  %v289_v29 = vsub.f32 %v240_v24, %v802_v39 }
  0xc8   :  { %v613_v30 = vpop.eup %612  ;;  %v484_v31 = vmul.f32 %v611_v28, %v830_v22  ;;  %v445_v32 = vmul.f32 1.442695, %v372_v25  ;;  %v443_v33 = vmul.f32 1.442695, %v371_v26  ;;  %v330_v34 = vmul.f32 %v290_v27, %v290_v27 }
  0xc9   :  { %v483_v35 = vmul.f32 %v613_v30, %v830_v22  ;;  %v329_v36 = vmul.f32 %v289_v29, %v289_v29 }
  0xca   :  { %522 = vst [vmem:[#allocation2 + $0xd8] sm:$0xff] %v484_v31  ;;  %626 = vpow2.f32 %v445_v32  ;;  %v374_v37 = vmul.f32 %v809_v44, %v330_v34 }
  0xcb   :  { %v615_v38 = vpop.eup %614  ;;  %521 = vst [vmem:[#allocation2 + $0xd0] sm:$0xff] %v483_v35  ;;  %628 = vpow2.f32 %v443_v33  ;;  %v373_v40 = vmul.f32 %v809_v44, %v329_v36 }
  0xcc   :  { %v617_v41 = vpop.eup %616  ;;  %v486_v39 = vmul.f32 %v615_v38, %v830_v22  ;;  %v449_v42 = vmul.f32 1.442695, %v374_v37 }
  0xcd   :  { %v485_v43 = vmul.f32 %v617_v41, %v830_v22  ;;  %v447_v45 = vmul.f32 1.442695, %v373_v40 }
  0xce   :  { %524 = vst [vmem:[#allocation2 + $0xe8] sm:$0xff] %v486_v39  ;;  %630 = vpow2.f32 %v449_v42 }
  0xcf   :  { %v619_v46 = vpop.eup %618  ;;  %523 = vst [vmem:[#allocation2 + $0xe0] sm:$0xff] %v485_v43  ;;  %632 = vpow2.f32 %v447_v45 }
  0xd0   :  { %v621_v47 = vpop.eup %620  ;;  %v488_v48 = vmul.f32 %v619_v46, %v830_v22 }
  0xd1   :  { %v487_v49 = vmul.f32 %v621_v47, %v830_v22 }
  0xd2   :  { %526 = vst [vmem:[#allocation2 + $0xf8] sm:$0xff] %v488_v48 }
  0xd3   :  { %v623_v50 = vpop.eup %622  ;;  %525 = vst [vmem:[#allocation2 + $0xf0] sm:$0xff] %v487_v49 }
  0xd4   :  { %v625_v44 = vpop.eup %624  ;;  %v490_v51 = vmul.f32 %v623_v50, %v830_v22 }
  0xd5   :  { %v489_v52 = vmul.f32 %v625_v44, %v830_v22 }
  0xd6   :  { %528 = vst [vmem:[#allocation2 + $0x108] sm:$0xff] %v490_v51 }
  0xd7   :  { %v627_v53 = vpop.eup %626  ;;  %527 = vst [vmem:[#allocation2 + $0x100] sm:$0xff] %v489_v52 }
  0xd8   :  { %v629_v54 = vpop.eup %628  ;;  %v492_v55 = vmul.f32 %v627_v53, %v830_v22 }
  0xd9   :  { %v491_v56 = vmul.f32 %v629_v54, %v830_v22 }
  0xda   :  { %530 = vst [vmem:[#allocation2 + $0x118] sm:$0xff] %v492_v55 }
  0xdb   :  { %v631_v57 = vpop.eup %630  ;;  %529 = vst [vmem:[#allocation2 + $0x110] sm:$0xff] %v491_v56 }
  0xdc   :  { %v633_v58 = vpop.eup %632  ;;  %v494_v59 = vmul.f32 %v631_v57, %v830_v22 }
  0xdd   :  { %v493_v60 = vmul.f32 %v633_v58, %v830_v22 }
  0xde   :  { %532 = vst [vmem:[#allocation2 + $0x128] sm:$0xff] %v494_v59 }
  0xdf   :  { %531 = vst [vmem:[#allocation2 + $0x120] sm:$0xff] %v493_v60 }
  0xe0   :  { %645 = shalt.err (!%p642_p4)
}
  0xe1   :  { %s658_s18 = smov 128   ;;  %s659_s19 = smov 8  }
  0xe2   :  { %544 = dma.vmem_to_hbm [thread:$0]  %s539_s3, 4864, %s935_s4, [#allocation3], %s658_s18, %s658_s18, %s659_s19  }
  0xe3   :  { %654 = dma.done.wait [#allocation3], 4864  }
  0xe4   :  { %655 = vsyncadd [#allocation3], 4294962432 }
  0xe5   :  { %548 = vsyncpa [#allocation3], 1 }

</bundles_post_ra>
